<compile_context>
chip_gen: v7x
topology: tpu7x:2x2x1
jax: 0.10.0
libtpu: 0.0.40
codegen_flags: <defaults>
</compile_context>

<pallas_src>
import math
import jax
import jax.numpy as jnp
from jax.experimental import pallas as pl
from jax.experimental.pallas import tpu as pltpu

_LN_EPS = 1e-5  # torch.nn.LayerNorm default


def _embed_kernel(x_ref, g1_ref, b1_ref, w_ref, b_ref, g2_ref, b2_ref, pos_ref, o_ref):
    # x_ref:   (tn, patch_dim)   patch-row tile (one batch element), bf16
    # g1/b1:   (1, patch_dim)    LayerNorm(patch_dim) scale / shift, f32
    # w_ref:   (patch_dim, dim)  patch-embedding weight, stored transposed (in, out), bf16
    # b_ref:   (1, dim)          linear bias, f32
    # g2/b2:   (1, dim)          LayerNorm(dim) scale / shift, f32
    # pos_ref: (tn, dim)         positional embedding rows for this patch tile (pos[1:]), bf16
    # o_ref:   (tn, dim)

    # LayerNorm over patch_dim -- statistics in f32 for numerical stability.
    x = x_ref[...].astype(jnp.float32)
    mu = jnp.mean(x, axis=-1, keepdims=True)
    xc = x - mu
    var = jnp.mean(xc * xc, axis=-1, keepdims=True)
    xn = xc * jax.lax.rsqrt(var + _LN_EPS)
    xn = xn * g1_ref[...].astype(jnp.float32) + b1_ref[...].astype(jnp.float32)

    # Linear (MXU): bf16 operands, f32 accumulation.
    h = jnp.dot(xn.astype(w_ref.dtype), w_ref[...],
                preferred_element_type=jnp.float32) + b_ref[...].astype(jnp.float32)

    # LayerNorm over dim.
    mu2 = jnp.mean(h, axis=-1, keepdims=True)
    hc = h - mu2
    var2 = jnp.mean(hc * hc, axis=-1, keepdims=True)
    hn = hc * jax.lax.rsqrt(var2 + _LN_EPS)
    hn = hn * g2_ref[...].astype(jnp.float32) + b2_ref[...].astype(jnp.float32)

    # Add positional embedding for the patch rows (cls row is handled in the wrapper).
    o_ref[...] = (hn + pos_ref[...].astype(jnp.float32)).astype(o_ref.dtype)


def _choose_tile(num_patches, tn_max, batch):
    """Patch-row tile size.

    Prefer an exact divisor of num_patches (no jnp.pad copy) that is sublane-aligned
    (multiple of 8) or the full patch axis.  When batch < 2, also try to create >= 2
    tiles so both v7x TensorCores get work.
    """
    divisors = [d for d in range(1, num_patches + 1)
                if num_patches % d == 0 and d <= tn_max
                and (d % 8 == 0 or d == num_patches)]
    if batch < 2 and num_patches > 8:
        small = [d for d in divisors if d < num_patches]
        if small:
            return max(small)
        # No clean split: pad to (at least) two sublane-aligned tiles instead.
        half = -(-num_patches // 2)
        return min(-(-half // 8) * 8, max(8, (tn_max // 8) * 8))
    if divisors:
        return max(divisors)
    # num_patches itself exceeds tn_max and has no aligned divisor below it: pad.
    return max(8, (min(tn_max, 256) // 8) * 8)


def image_embedder(img, ln1_g, ln1_b, w, b, ln2_g, ln2_b, cls_token, pos_embedding,
                   *, patch_size, tn_max=512, compute_dtype=jnp.bfloat16, out_dtype=None):
    """img: [B, C, H, W] -> [B, num_patches + 1, dim]  (ImageEmbedder.forward, eval mode)."""
    B, C, H, W = img.shape
    p = patch_size
    assert H % p == 0 and W % p == 0, "Image dimensions must be divisible by the patch size."
    gh, gw = H // p, W // p
    num_patches = gh * gw
    patch_dim = C * p * p
    dim = w.shape[1]
    out_dtype = compute_dtype if out_dtype is None else out_dtype

    # Rearrange 'b c (h p1) (w p2) -> b (h w) (p1 p2 c)'.  Cast to bf16 FIRST so the
    # materialized transpose is half-width HBM traffic.
    x = img.astype(compute_dtype)
    x = x.reshape(B, C, gh, p, gw, p).transpose(0, 2, 4, 3, 5, 1)
    x = x.reshape(B, num_patches, patch_dim)

    pos_patches = pos_embedding[:, 1:, :].astype(compute_dtype)  # row 0 belongs to the cls token
    w_q = w.astype(compute_dtype)

    tn = _choose_tile(num_patches, tn_max, B)
    n_pad = (-num_patches) % tn
    if n_pad:  # only hit when num_patches has no clean divisor; avoided in common configs
        x = jnp.pad(x, ((0, 0), (0, n_pad), (0, 0)))
        pos_patches = jnp.pad(pos_patches, ((0, 0), (0, n_pad), (0, 0)))
    n_padded = num_patches + n_pad
    n_tiles = n_padded // tn

    # VMEM budget: double-buffered x/pos/out tiles + single-buffered resident weights/params.
    c_bytes = jnp.dtype(compute_dtype).itemsize
    o_bytes = jnp.dtype(out_dtype).itemsize
    dbuf = 2 * tn * (patch_dim * c_bytes + dim * c_bytes + dim * o_bytes)
    resident = patch_dim * dim * c_bytes + (2 * patch_dim + 3 * dim) * 4
    vmem_limit = int(min(64 * 2**20, max(8 * 2**20, 2 * (dbuf + resident))))

    invariant = dict(pipeline_mode=pl.Buffered(1))  # never re-fetched; single VMEM buffer

    out = pl.pallas_call(
        _embed_kernel,
        out_shape=jax.ShapeDtypeStruct((B, n_padded, dim), out_dtype),
        grid_spec=pltpu.PrefetchScalarGridSpec(
            num_scalar_prefetch=0,
            # Batch is the INNER grid axis: the pos tile (index depends only on ni) stays
            # resident across the whole batch sweep instead of being re-DMA'd B times.
            grid=(n_tiles, B),
            in_specs=[
                pl.BlockSpec((None, tn, patch_dim), lambda ni, bi: (bi, ni, 0)),           # patches
                pl.BlockSpec((1, patch_dim), lambda ni, bi: (0, 0), **invariant),          # ln1 gamma
                pl.BlockSpec((1, patch_dim), lambda ni, bi: (0, 0), **invariant),          # ln1 beta
                pl.BlockSpec((patch_dim, dim), lambda ni, bi: (0, 0), **invariant),        # W (resident)
                pl.BlockSpec((1, dim), lambda ni, bi: (0, 0), **invariant),                # bias
                pl.BlockSpec((1, dim), lambda ni, bi: (0, 0), **invariant),                # ln2 gamma
                pl.BlockSpec((1, dim), lambda ni, bi: (0, 0), **invariant),                # ln2 beta
                pl.BlockSpec((None, tn, dim), lambda ni, bi: (0, ni, 0)),                  # pos rows
            ],
            out_specs=pl.BlockSpec((None, tn, dim), lambda ni, bi: (bi, ni, 0)),
        ),
        compiler_params=pltpu.CompilerParams(
            dimension_semantics=("parallel", "parallel"),
            vmem_limit_bytes=vmem_limit,
        ),
    )(x,
      ln1_g.reshape(1, patch_dim).astype(jnp.float32),
      ln1_b.reshape(1, patch_dim).astype(jnp.float32),
      w_q,
      b.reshape(1, dim).astype(jnp.float32),
      ln2_g.reshape(1, dim).astype(jnp.float32),
      ln2_b.reshape(1, dim).astype(jnp.float32),
      pos_patches)

    out = out[:, :num_patches, :]

    # cls token bypasses the patch embedding; add its positional row and prepend.
    cls_row = jnp.broadcast_to(cls_token + pos_embedding[:, 0:1, :], (B, 1, dim)).astype(out.dtype)
    return jnp.concatenate([cls_row, out], axis=1)


def _reference(img, ln1_g, ln1_b, w, b, ln2_g, ln2_b, cls_token, pos_embedding, patch_size,
               compute_dtype=jnp.bfloat16):
    """Pure-JAX reference mirroring the kernel's mixed-precision choices (bf16 I/O, f32 stats)."""
    B, C, H, W = img.shape
    p = patch_size
    gh, gw = H // p, W // p
    x = img.astype(compute_dtype).astype(jnp.float32)
    x = x.reshape(B, C, gh, p, gw, p).transpose(0, 2, 4, 3, 5, 1).reshape(B, gh * gw, C * p * p)

    def ln(z, g, bb):
        mu = z.mean(-1, keepdims=True)
        var = ((z - mu) ** 2).mean(-1, keepdims=True)
        return (z - mu) * jax.lax.rsqrt(var + _LN_EPS) * g + bb

    x = ln(x, ln1_g, ln1_b)
    h = jnp.dot(x.astype(compute_dtype), w.astype(compute_dtype),
                preferred_element_type=jnp.float32) + b
    h = ln(h, ln2_g, ln2_b)
    h = h + pos_embedding[:, 1:, :].astype(compute_dtype).astype(jnp.float32)
    cls = jnp.broadcast_to(cls_token + pos_embedding[:, 0:1, :], (B, 1, h.shape[-1]))
    return jnp.concatenate([cls, h], axis=1)


if __name__ == "__main__":
    # Small shapes consistent with the module: dim=64, image_size=16, patch_size=4.
    B, C, image_size, patch_size, dim = 2, 3, 16, 4, 64
    num_patches = (image_size // patch_size) ** 2       # 16
    patch_dim = 3 * patch_size ** 2                      # 48

    key = jax.random.PRNGKey(0)
    k_img, k_w, k_b, k_cls, k_pos, k_g1, k_b1, k_g2, k_b2 = jax.random.split(key, 9)

    img = jax.random.normal(k_img, (B, C, image_size, image_size), dtype=jnp.float32)

    # Parameters (nn.Linear default init range; weight kept transposed (in, out) for the kernel).
    lim = 1.0 / math.sqrt(patch_dim)
    w = jax.random.uniform(k_w, (patch_dim, dim), minval=-lim, maxval=lim, dtype=jnp.float32)
    b = jax.random.uniform(k_b, (dim,), minval=-lim, maxval=lim, dtype=jnp.float32)
    # LayerNorm affine params (default ones/zeros; perturb to exercise the scale/shift path).
    ln1_g = 1.0 + 0.1 * jax.random.normal(k_g1, (patch_dim,), dtype=jnp.float32)
    ln1_b = 0.1 * jax.random.normal(k_b1, (patch_dim,), dtype=jnp.float32)
    ln2_g = 1.0 + 0.1 * jax.random.normal(k_g2, (dim,), dtype=jnp.float32)
    ln2_b = 0.1 * jax.random.normal(k_b2, (dim,), dtype=jnp.float32)
    cls_token = jax.random.normal(k_cls, (1, 1, dim), dtype=jnp.float32)
    pos_embedding = jax.random.normal(k_pos, (1, num_patches + 1, dim), dtype=jnp.float32)

    out = image_embedder(img, ln1_g, ln1_b, w, b, ln2_g, ln2_b, cls_token, pos_embedding,
                         patch_size=patch_size)
    out = jax.block_until_ready(out)

    ref = _reference(img, ln1_g, ln1_b, w, b, ln2_g, ln2_b, cls_token, pos_embedding, patch_size)
    assert out.shape == (B, num_patches + 1, dim)
    out_f32 = out.astype(jnp.float32)
    assert jnp.allclose(out_f32, ref, atol=2e-2, rtol=2e-2), (
        "mismatch vs reference, max abs err = %s" % float(jnp.max(jnp.abs(out_f32 - ref))))

    print("KERNEL_OK")
</pallas_src>

<mosaic_0001>
module attributes {stable_mosaic.version = 11 : i64} {
  func.func @_embed_kernel(%arg0: i32, %arg1: i32, %arg2: memref<1x16x48xbf16, #tpu.memory_space<vmem>>, %arg3: memref<1x48xf32, #tpu.memory_space<vmem>>, %arg4: memref<1x48xf32, #tpu.memory_space<vmem>>, %arg5: memref<48x64xbf16, #tpu.memory_space<vmem>>, %arg6: memref<1x64xf32, #tpu.memory_space<vmem>>, %arg7: memref<1x64xf32, #tpu.memory_space<vmem>>, %arg8: memref<1x64xf32, #tpu.memory_space<vmem>>, %arg9: memref<1x16x64xbf16, #tpu.memory_space<vmem>>, %arg10: memref<1x16x64xbf16, #tpu.memory_space<vmem>>) attributes {dimension_semantics = [#tpu.dimension_semantics<parallel>, #tpu.dimension_semantics<parallel>], iteration_bounds = array<i64: 1, 2>, scalar_prefetch = 0 : i64, scratch_operands = 0 : i64, tpu.core_type = #tpu.core_type<tc>, window_params = [{transform_indices = @transform_0, window_bounds = array<i64: 1, 16, 48>}, {pipeline_mode = #tpu.pipeline_mode<synchronous>, transform_indices = @transform_1, window_bounds = array<i64: 1, 48>}, {pipeline_mode = #tpu.pipeline_mode<synchronous>, transform_indices = @transform_2, window_bounds = array<i64: 1, 48>}, {pipeline_mode = #tpu.pipeline_mode<synchronous>, transform_indices = @transform_3, window_bounds = array<i64: 48, 64>}, {pipeline_mode = #tpu.pipeline_mode<synchronous>, transform_indices = @transform_4, window_bounds = array<i64: 1, 64>}, {pipeline_mode = #tpu.pipeline_mode<synchronous>, transform_indices = @transform_5, window_bounds = array<i64: 1, 64>}, {pipeline_mode = #tpu.pipeline_mode<synchronous>, transform_indices = @transform_6, window_bounds = array<i64: 1, 64>}, {transform_indices = @transform_7, window_bounds = array<i64: 1, 16, 64>}, {transform_indices = @transform_8, window_bounds = array<i64: 1, 16, 64>}]} {
    %c0 = arith.constant 0 : index
    %c0_0 = arith.constant 0 : index
    %c0_1 = arith.constant 0 : index
    %0 = vector.load %arg2[%c0, %c0_0, %c0_1] : memref<1x16x48xbf16, #tpu.memory_space<vmem>>, vector<1x16x48xbf16>
    %1 = vector.shape_cast %0 : vector<1x16x48xbf16> to vector<16x48xbf16>
    %2 = arith.extf %1 : vector<16x48xbf16> to vector<16x48xf32>
    %cst = arith.constant dense<0.000000e+00> : vector<16xf32>
    %3 = vector.multi_reduction <add>, %2, %cst [1] : vector<16x48xf32> to vector<16xf32>
    %4 = vector.shape_cast %3 : vector<16xf32> to vector<16x1xf32>
    %cst_2 = arith.constant 4.800000e+01 : f32
    %5 = vector.broadcast %cst_2 : f32 to vector<16x1xf32>
    %6 = arith.divf %4, %5 : vector<16x1xf32>
    %7 = vector.broadcast %6 : vector<16x1xf32> to vector<16x48xf32>
    %8 = arith.subf %2, %7 : vector<16x48xf32>
    %9 = arith.mulf %8, %8 : vector<16x48xf32>
    %cst_3 = arith.constant dense<0.000000e+00> : vector<16xf32>
    %10 = vector.multi_reduction <add>, %9, %cst_3 [1] : vector<16x48xf32> to vector<16xf32>
    %11 = vector.shape_cast %10 : vector<16xf32> to vector<16x1xf32>
    %cst_4 = arith.constant 4.800000e+01 : f32
    %12 = vector.broadcast %cst_4 : f32 to vector<16x1xf32>
    %13 = arith.divf %11, %12 : vector<16x1xf32>
    %cst_5 = arith.constant 9.99999974E-6 : f32
    %14 = vector.broadcast %cst_5 : f32 to vector<16x1xf32>
    %15 = arith.addf %13, %14 : vector<16x1xf32>
    %16 = math.rsqrt %15 : vector<16x1xf32>
    %17 = vector.broadcast %16 : vector<16x1xf32> to vector<16x48xf32>
    %18 = arith.mulf %8, %17 : vector<16x48xf32>
    %c0_6 = arith.constant 0 : index
    %c0_7 = arith.constant 0 : index
    %19 = vector.load %arg3[%c0_6, %c0_7] : memref<1x48xf32, #tpu.memory_space<vmem>>, vector<1x48xf32>
    %20 = vector.broadcast %19 : vector<1x48xf32> to vector<16x48xf32>
    %21 = arith.mulf %18, %20 : vector<16x48xf32>
    %c0_8 = arith.constant 0 : index
    %c0_9 = arith.constant 0 : index
    %22 = vector.load %arg4[%c0_8, %c0_9] : memref<1x48xf32, #tpu.memory_space<vmem>>, vector<1x48xf32>
    %23 = vector.broadcast %22 : vector<1x48xf32> to vector<16x48xf32>
    %24 = arith.addf %21, %23 : vector<16x48xf32>
    %25 = arith.truncf %24 : vector<16x48xf32> to vector<16x48xbf16>
    %c0_10 = arith.constant 0 : index
    %c0_11 = arith.constant 0 : index
    %26 = vector.load %arg5[%c0_10, %c0_11] : memref<48x64xbf16, #tpu.memory_space<vmem>>, vector<48x64xbf16>
    %cst_12 = arith.constant dense<0.000000e+00> : vector<16x64xf32>
    %27 = tpu.matmul %25, %26, %cst_12 {dimension_numbers = #tpu.dot_dimension_numbers<[1], [0], [0], [1], [0, 0, 1, 1], [], []>} : vector<16x48xbf16>, vector<48x64xbf16>, vector<16x64xf32> -> vector<16x64xf32>
    %c0_13 = arith.constant 0 : index
    %c0_14 = arith.constant 0 : index
    %28 = vector.load %arg6[%c0_13, %c0_14] : memref<1x64xf32, #tpu.memory_space<vmem>>, vector<1x64xf32>
    %29 = vector.broadcast %28 : vector<1x64xf32> to vector<16x64xf32>
    %30 = arith.addf %27, %29 : vector<16x64xf32>
    %cst_15 = arith.constant dense<0.000000e+00> : vector<16xf32>
    %31 = vector.multi_reduction <add>, %30, %cst_15 [1] : vector<16x64xf32> to vector<16xf32>
    %32 = vector.shape_cast %31 : vector<16xf32> to vector<16x1xf32>
    %cst_16 = arith.constant 6.400000e+01 : f32
    %33 = vector.broadcast %cst_16 : f32 to vector<16x1xf32>
    %34 = arith.divf %32, %33 : vector<16x1xf32>
    %35 = vector.broadcast %34 : vector<16x1xf32> to vector<16x64xf32>
    %36 = arith.subf %30, %35 : vector<16x64xf32>
    %37 = arith.mulf %36, %36 : vector<16x64xf32>
    %cst_17 = arith.constant dense<0.000000e+00> : vector<16xf32>
    %38 = vector.multi_reduction <add>, %37, %cst_17 [1] : vector<16x64xf32> to vector<16xf32>
    %39 = vector.shape_cast %38 : vector<16xf32> to vector<16x1xf32>
    %cst_18 = arith.constant 6.400000e+01 : f32
    %40 = vector.broadcast %cst_18 : f32 to vector<16x1xf32>
    %41 = arith.divf %39, %40 : vector<16x1xf32>
    %cst_19 = arith.constant 9.99999974E-6 : f32
    %42 = vector.broadcast %cst_19 : f32 to vector<16x1xf32>
    %43 = arith.addf %41, %42 : vector<16x1xf32>
    %44 = math.rsqrt %43 : vector<16x1xf32>
    %45 = vector.broadcast %44 : vector<16x1xf32> to vector<16x64xf32>
    %46 = arith.mulf %36, %45 : vector<16x64xf32>
    %c0_20 = arith.constant 0 : index
    %c0_21 = arith.constant 0 : index
    %47 = vector.load %arg7[%c0_20, %c0_21] : memref<1x64xf32, #tpu.memory_space<vmem>>, vector<1x64xf32>
    %48 = vector.broadcast %47 : vector<1x64xf32> to vector<16x64xf32>
    %49 = arith.mulf %46, %48 : vector<16x64xf32>
    %c0_22 = arith.constant 0 : index
    %c0_23 = arith.constant 0 : index
    %50 = vector.load %arg8[%c0_22, %c0_23] : memref<1x64xf32, #tpu.memory_space<vmem>>, vector<1x64xf32>
    %51 = vector.broadcast %50 : vector<1x64xf32> to vector<16x64xf32>
    %52 = arith.addf %49, %51 : vector<16x64xf32>
    %c0_24 = arith.constant 0 : index
    %c0_25 = arith.constant 0 : index
    %c0_26 = arith.constant 0 : index
    %53 = vector.load %arg9[%c0_24, %c0_25, %c0_26] : memref<1x16x64xbf16, #tpu.memory_space<vmem>>, vector<1x16x64xbf16>
    %54 = vector.shape_cast %53 : vector<1x16x64xbf16> to vector<16x64xbf16>
    %55 = arith.extf %54 : vector<16x64xbf16> to vector<16x64xf32>
    %56 = arith.addf %52, %55 : vector<16x64xf32>
    %57 = arith.truncf %56 : vector<16x64xf32> to vector<16x64xbf16>
    %c0_27 = arith.constant 0 : index
    %c0_28 = arith.constant 0 : index
    %c0_29 = arith.constant 0 : index
    %58 = vector.load %arg10[%c0_27, %c0_28, %c0_29] : memref<1x16x64xbf16, #tpu.memory_space<vmem>>, vector<1x16x64xbf16>
    %59 = vector.shape_cast %58 : vector<1x16x64xbf16> to vector<16x64xbf16>
    %60 = vector.shape_cast %57 : vector<16x64xbf16> to vector<1x16x64xbf16>
    tpu.vector_store %arg10[%c0_27, %c0_28, %c0_29], %60 {strides = array<i32>} : memref<1x16x64xbf16, #tpu.memory_space<vmem>>, vector<1x16x64xbf16>,
    return
  }
  func.func @transform_0(%arg0: i32, %arg1: i32) -> (i32, i32, i32) {
    %c0_i32 = arith.constant 0 : i32
    %c0_i32_0 = arith.constant 0 : i32
    return %arg1, %arg0, %c0_i32 : i32, i32, i32
  }
  func.func @transform_1(%arg0: i32, %arg1: i32) -> (i32, i32) {
    %c0_i32 = arith.constant 0 : i32
    %c0_i32_0 = arith.constant 0 : i32
    %c0_i32_1 = arith.constant 0 : i32
    return %c0_i32, %c0_i32_0 : i32, i32
  }
  func.func @transform_2(%arg0: i32, %arg1: i32) -> (i32, i32) {
    %c0_i32 = arith.constant 0 : i32
    %c0_i32_0 = arith.constant 0 : i32
    %c0_i32_1 = arith.constant 0 : i32
    return %c0_i32, %c0_i32_0 : i32, i32
  }
  func.func @transform_3(%arg0: i32, %arg1: i32) -> (i32, i32) {
    %c0_i32 = arith.constant 0 : i32
    %c0_i32_0 = arith.constant 0 : i32
    %c0_i32_1 = arith.constant 0 : i32
    return %c0_i32, %c0_i32_0 : i32, i32
  }
  func.func @transform_4(%arg0: i32, %arg1: i32) -> (i32, i32) {
    %c0_i32 = arith.constant 0 : i32
    %c0_i32_0 = arith.constant 0 : i32
    %c0_i32_1 = arith.constant 0 : i32
    return %c0_i32, %c0_i32_0 : i32, i32
  }
  func.func @transform_5(%arg0: i32, %arg1: i32) -> (i32, i32) {
    %c0_i32 = arith.constant 0 : i32
    %c0_i32_0 = arith.constant 0 : i32
    %c0_i32_1 = arith.constant 0 : i32
    return %c0_i32, %c0_i32_0 : i32, i32
  }
  func.func @transform_6(%arg0: i32, %arg1: i32) -> (i32, i32) {
    %c0_i32 = arith.constant 0 : i32
    %c0_i32_0 = arith.constant 0 : i32
    %c0_i32_1 = arith.constant 0 : i32
    return %c0_i32, %c0_i32_0 : i32, i32
  }
  func.func @transform_7(%arg0: i32, %arg1: i32) -> (i32, i32, i32) {
    %c0_i32 = arith.constant 0 : i32
    %c0_i32_0 = arith.constant 0 : i32
    %c0_i32_1 = arith.constant 0 : i32
    return %c0_i32, %arg0, %c0_i32_0 : i32, i32, i32
  }
  func.func @transform_8(%arg0: i32, %arg1: i32) -> (i32, i32, i32) {
    %c0_i32 = arith.constant 0 : i32
    %c0_i32_0 = arith.constant 0 : i32
    return %arg1, %arg0, %c0_i32 : i32, i32, i32
  }
}

</mosaic_0001>

<bundles_post_ra>
// kernel: tpu_custom_call.1
= control target key start
LH: loop header
LB: loop body
LE: loop exit
PB: predicated region body
PF: predicated region fallthrough
CT: control target
= control target key end

     0   :  { %s1300_s0 = inlined_call_operand.hbm [shape: bf16[2,16,48], index: 0, kind: input, shape index: {}]   ;;  %s1301_s1 = inlined_call_operand.vmem [shape: f32[1,48], index: 1, kind: input, shape index: {}]   ;;  %s1302_s2 = inlined_call_operand.vmem [shape: f32[1,48], index: 2, kind: input, shape index: {}]   ;;  %s1303_s3 = inlined_call_operand.hbm [shape: bf16[48,64], index: 3, kind: input, shape index: {}]   ;;  %s1304_s4 = inlined_call_operand.vmem [shape: f32[1,64], index: 4, kind: input, shape index: {}]   ;;  %s1305_s5 = inlined_call_operand.vmem [shape: f32[1,64], index: 5, kind: input, shape index: {}]   ;;  %s1306_s6 = inlined_call_operand.vmem [shape: f32[1,64], index: 6, kind: input, shape index: {}]   ;;  %s1307_s7 = inlined_call_operand.vmem [shape: bf16[1,16,64], index: 7, kind: input, shape index: {}]   ;;  %s1308_s8 = inlined_call_operand.hbm [shape: bf16[2,16,64], index: 8, kind: output, shape index: {}]  }
   0x1   :  { %1316 = sst [smem:[#allocation12_spill]] %s1303_s3 }
   0x2   :  { %13 = vsyncpa [#allocation3], 0 }
   0x3   :  { %15 = vsyncpa [#allocation3 + $0x1], 0 }
   0x4   :  { %16 = vsyncpa [#allocation6], 0 }
   0x5   :  { %17 = vsyncpa [#allocation4], 0 }
   0x6   :  { %19 = vsyncpa [#allocation4 + $0x1], 0  ;;  %s1044_s27 = smov 0   ;;  %s1046_s28 = smov 0  }
   0x7   :  { %s1048_s29 = smov 0   ;;  %s1050_s30 = smov 0  }
   0x8   :  { %s1052_s9 = smov 0   ;;  %s1054_s10 = smov 0  }
   0x9 LB: > { %s699_s11 = sadd.s32 4294967295, %s988_s10   ;;  %s700_s12 = sadd.s32 4294967294, %s988_s10   ;;  %s988_s10 = sphi %s1054_s10, %s25_s10   ;;  %s984_s9 = sphi %s1052_s9, %s1341_s9   ;;  %s980_s30 = sphi %s1050_s30, %s1340_s30   ;;  %s976_s29 = sphi %s1048_s29, %s1339_s29   ;;  %s972_s28 = sphi %s1046_s28, %s1338_s28   ;;  %s968_s27 = sphi %s1044_s27, %s1337_s27  }
   0xa   : > { %p59_p0 = scmp.ne.s32.totalorder %s972_s28, %s968_s27  ;;  %p1078_p1 = scmp.eq.s32.totalorder %s699_s11, 0 }
   0xb   : > { %p1082_p2 = scmp.eq.s32.totalorder %s699_s11, 1  ;;  %p243_p3 = scmp.eq.s32.totalorder %s700_s12, 1 }
   0xc   : > { %s1317_s13 = scalar_select %p1078_p1, 1, 0 }
   0xd   : > { %s1318_s14 = scalar_select %p1082_p2, 1, 0 }
   0xe   : > { %p1088_p4 = por %p1078_p1, %p59_p0  ;;  %p701_p5 = scmp.ge.s32.totalorder %s988_s10, 1 }
   0xf   : > { %p1093_p6 = por %p243_p3, %p59_p0  ;;  %p250_p7 = scmp.lt.s32.totalorder %s988_s10, 3 }
  0x10   : > { %s1319_s15 = scalar_select %p1088_p4, 1, 0 }
  0x11   : > { %s1320_s16 = scalar_select %p1093_p6, 1, 0 }
  0x12   : > { %p1098_p8 = pnand %p701_p5, %p250_p7  ;;  %s990_s18 = smov [#allocation5]  }
  0x13   : > { %1321 = sst [smem:[#allocation11_spill]] %s1320_s16  ;;  %s268_s19 = sshll.u32 %s990_s18, 4  ;;  %s269_s19 = int_to_ptr.vmem [resolvable:$true] %s268_s19 }
  0x14   : > { %s1322_s17 = scalar_select %p1098_p8, 1, 0 }
  0x15   : > { %p762_p9 = pneg %p1098_p8  ;;  %s34_s21 = sadd.s32 1, %s984_s9 }
  0x16   : > { %s1324_s3 = sld [smem:[#allocation12_spill]] }
  0x17   : > { %p1107_p11 = pnand %p762_p9, %p1078_p1 }
  0x19   : > { %p846_p13 = pneg %p1107_p11 }
  0x1c   : > { %s844_s24 = scalar_lea.hbm %s1324_s3, 384 }
  0x1d   : > { %p845_p12 = scmp.ne.s32.totalorder %s1324_s3, %s844_s24  ;;  %p851_p5 = scmp.lt.u32.totalorder %s844_s24, %s1324_s3 }
  0x1f   : > { %p847_p0 = pnand %p846_p13, %p845_p12 }
  0x21   : > { %p848_p3 = pneg %p847_p0 }
  0x23   : > { %p853_p7 = pnand %p851_p5, %p848_p3 }
  0x25   : > { %856 = shalt.err (!%p853_p7)
}
  0x26   : > { %s857_s18 = scalar_lea.vmem %s269_s19, 384  ;;  %p865_p1 = scmp.lt.s32.totalorder %s269_s19, %s269_s19 }
  0x27   : > { %p858_p9 = scmp.ne.s32.totalorder %s269_s19, %s857_s18  ;;  %p866_p4 = scmp.lt.s32.totalorder %s857_s18, %s857_s18 }
  0x29   : > { %p860_p10 = pnand %p858_p9, %p846_p13  ;;  %p867_p8 = por %p866_p4, %p865_p1 }
  0x2b   : > { %p861_p6 = pneg %p860_p10 }
  0x2d   : > { %p868_p2 = pnand %p867_p8, %p861_p6 }
  0x2f   : > { %871 = shalt.err (!%p868_p2)
}
  0x30   : > { %s1313_s22 = smov 64   ;;  %s1314_s23 = smov 4  }
  0x31   : > { %765 = dma.hbm_to_vmem [thread:$0]  (!%p1107_p11), %s1324_s3, 384, %s269_s19, [#allocation6], %s1313_s22, %s1313_s22, %s1314_s23  }
  0x32   : > { %p35_p1 = scmp.ge.s32.totalorder %s34_s21, 2  ;;  %s46_s26 = sadd.s32 1, %s976_s29 }
  0x33   : > { %p53_p2 = scmp.ne.s32.totalorder %s976_s29, %s972_s28  ;;  %p54_p4 = scmp.eq.s32.totalorder %s988_s10, 0 }
  0x34   : > { %s1343_s21 = smov (%p35_p1, %s34_s21), 0  ;;  %p1326_p8 = scmp.ne.s32.totalorder %s1318_s14, 0 }
  0x35   : > { %p1137_p6 = por %p54_p4, %p53_p2  ;;  %s41_s12 = ssub.s32 %s984_s9, %s1343_s21 }
  0x36   : > { %p1143_p10 = por %p1326_p8, %p53_p2  ;;  %p775_p12 = scmp.lt.s32.totalorder %s988_s10, 2 }
  0x37   : > { %p44_p11 = scmp.eq.s32.totalorder %s41_s12, 0  ;;  %s300_s19 = sand.u32 1, %s976_s29  }
  0x38   : > { %s705_s18 = sshll.u32 %s300_s19, 3  ;;  %s728_s25 = sshll.u32 %s984_s9, 7 }
  0x39   : > { %s1152_s24 = scalar_select %p44_p11, %s976_s29, %s46_s26  }
  0x3a   : > { %s1158_s3 = scalar_lea.hbm %s1300_s0, %s728_s25  ;;  %s304_s14 = scalar_lea.vmem [#allocation2], %s705_s18 }
  0x3b   : > { %s313_s16 = sshll.u32 %s304_s14, 4  ;;  %p1164_p13 = pnand %p775_p12, %p1137_p6  ;;  %s1160_s16 = int_to_ptr.vmem [resolvable:$true] %s313_s16 }
  0x3c   : > { %s1168_s26 = scalar_lea.sflag [#allocation3], %s300_s19  ;;  %s872_s22 = scalar_lea.hbm %s1158_s3, 128 }
  0x3d   : > { %p873_p0 = scmp.ne.s32.totalorder %s1158_s3, %s872_s22  ;;  %p874_p3 = pneg %p1164_p13 }
  0x3e   : > { %s877_s11 = scalar_lea.hbm %s1300_s0, 256  ;;  %p878_p9 = scmp.lt.u32.totalorder %s1158_s3, %s1300_s0 }
  0x3f   : > { %p875_p5 = pnand %p874_p3, %p873_p0  ;;  %p879_p1 = scmp.lt.u32.totalorder %s877_s11, %s872_s22 }
  0x40   : > { %p881_p4 = scmp.lt.u32.totalorder %s872_s22, %s1158_s3 }
  0x41   : > { %p876_p7 = pneg %p875_p5  ;;  %p880_p2 = por %p879_p1, %p878_p9 }
  0x43   : > { %p882_p6 = por %p881_p4, %p880_p2 }
  0x45   : > { %p883_p8 = pnand %p882_p6, %p876_p7 }
  0x47   : > { %886 = shalt.err (!%p883_p8)
}
  0x48   : > { %s887_s19 = scalar_lea.vmem %s1160_s16, 128  ;;  %s993_s23 = smov [#allocation2]  }
  0x49   : > { %p888_p12 = scmp.ne.s32.totalorder %s1160_s16, %s887_s19  ;;  %s892_s18 = sshll.u32 %s993_s23, 4  ;;  %s893_s18 = int_to_ptr.vmem [resolvable:$false] %s892_s18 }
  0x4a   : > { %s894_s25 = scalar_lea.vmem %s893_s18, 256  ;;  %p895_p5 = scmp.lt.s32.totalorder %s1160_s16, %s893_s18 }
  0x4b   : > { %p890_p11 = pnand %p888_p12, %p874_p3  ;;  %p896_p9 = scmp.lt.s32.totalorder %s894_s25, %s887_s19 }
  0x4d   : > { %p891_p0 = pneg %p890_p11  ;;  %p897_p1 = por %p896_p9, %p895_p5 }
  0x4f   : > { %p898_p2 = pnand %p897_p1, %p891_p0 }
  0x51   : > { %901 = shalt.err (!%p898_p2)
}
  0x52   : > { %s1329_s22 = smov 4   ;;  %s1330_s11 = smov 64  }
  0x53   : > { %769 = dma.hbm_to_vmem [thread:$0]  (!%p1164_p13), %s1158_s3, 128, %s1160_s16, %s1168_s26, %s1330_s11, %s1330_s11, %s1329_s22  }
  0x54   : > { %p1331_p3 = scmp.ne.s32.totalorder %s1322_s17, 0 }
  0x55   : > { %s1202_s14 = sand.u32 (!%p1331_p3), 1, %s972_s28   ;;  %p1332_p7 = scmp.ne.s32.totalorder (!%p1331_p3), %s1319_s15, 0 }
  0x56   : > { %325 = sbr.rel (%p1331_p3) target bundleno = 967 (0x3c7), region = 52  ;;  %s709_s19 = sshll.u32 (!%p1331_p3), %s1202_s14, 3 }
  0x57   : > { %s328_s23 = scalar_lea.sflag (!%p1331_p3), [#allocation3], %s1202_s14  ;;  %s331_s12 = scalar_lea.vmem (!%p1331_p3), [#allocation2], %s709_s19 }
  0x5d   : > { %955 = dma.done.wait (%p1332_p7), %s328_s23, 128  }
  0x5e   : > { %957 = vsyncadd (%p1332_p7), %s328_s23, 4294967168  ;;  %p1333_p13 = scmp.ne.s32.totalorder %s1317_s13, 0 }
  0x60   : > { %959 = dma.done.wait (%p1333_p13), [#allocation6], 384  }
  0x61   : > { %961 = vsyncadd (%p1333_p13), [#allocation6], 4294966912  ;;  %v733_v0 = vld [vmem:[%s331_s12] sm:$0xff]   ;;  %vm386_vm0 = vcmask 392192   ;;  %v833_v15 = vld [vmem:[#allocation5] sm:$0xff]   ;;  %v994_v16 = vmov 0.0  }
  0x62   : > { %v734_v1 = vunpack.c.l.bf16 %v733_v0  ;;  %v735_v2 = vunpack.c.h.bf16 %v733_v0  ;;  %744 = vmatprep.subr.bf16.mxu0 %v994_v16  ;;  %v834_v17 = vld [vmem:[#allocation5 + $0x8] sm:$0xff]   ;;  %v835_v18 = vld [vmem:[#allocation5 + $0x10] sm:$0xff]   ;;  %vm995_vm1 = vmmov 0   ;;  %vm508_vm2 = vcmask 523264   ;;  %s731_s3 = sshll.u32 %s980_s30, 7  ;;  %s372_s13 = scalar_lea.vmem [#allocation7], %s709_s19 }
  0x63   : > { %745 = vmatpush3.bf16.msra.mxu0 %v833_v15  ;;  %750 = vmatprep.mubr.msk.bf16.mxu0 %vm995_vm1, %v994_v16  ;;  %v712_v27 = vld [vmem:[%s1301_s1] ss:$0 sm:$0xff]  ;;  %s587_s15 = sshll.u32 %s372_s13, 4  ;;  %vm568_vm3 = vcmask 519168   ;;  %s1249_s26 = scalar_lea.hbm %s1308_s8, %s731_s3  ;;  %s1251_s15 = int_to_ptr.vmem [resolvable:$true] %s587_s15 }
  0x64   : > { %v387_v3 = vsel %vm386_vm0, %v734_v1, 0.0  ;;  %v390_v4 = vsel %vm386_vm0, %v735_v2, 0.0  ;;  %746 = vmatprep.subr.bf16.mxu0 %v994_v16  ;;  %v713_v31 = vld [vmem:[%s1302_s2] ss:$0 sm:$0xff]  ;;  %s572_s30 = scalar_lea.sflag [#allocation4], %s1202_s14  ;;  %s902_s18 = scalar_lea.vmem %s1251_s15, 128 }
  0x65   : > { %388 = vadd.xlane.f32.xlu0 %v387_v3  ;;  %v714_v36 = vld [vmem:[%s1304_s4] ss:$0 sm:$0xff]  ;;  %p903_p4 = scmp.ne.s32.totalorder %s1251_s15, %s902_s18  ;;  %s996_s19 = smov [#allocation7]  }
  0x66   : > { %v719_v62 = vld [vmem:[%s1305_s5] ss:$0 sm:$0xff]  ;;  %s906_s25 = sshll.u32 %s996_s19, 4  ;;  %s907_s25 = int_to_ptr.vmem [resolvable:$false] %s906_s25 }
  0x67   : > { %747 = vmatpush3.bf16.msra.mxu0 %v834_v17  ;;  %v737_v63 = vld [vmem:[%s1307_s7] sm:$0xff]   ;;  %p904_p6 = pnand %p903_p4, %p1143_p10  ;;  %s908_s22 = scalar_lea.vmem %s907_s25, 256 }
  0x68   : > { %748 = vmatprep.subr.bf16.mxu0 %v994_v16  ;;  %v738_v3 = vunpack.c.l.bf16 %v737_v63  ;;  %p909_p12 = scmp.lt.s32.totalorder %s1251_s15, %s907_s25  ;;  %p910_p11 = scmp.lt.s32.totalorder %s908_s22, %s902_s18 }
  0x69   : > { %391 = vadd.xlane.f32.xlu0 %v390_v4  ;;  %p905_p8 = pneg %p904_p6 }
  0x6a   : > { %p911_p0 = por %p910_p11, %p909_p12 }
  0x6b   : > { %749 = vmatpush3.bf16.msra.mxu0 %v835_v18 }
  0x6c   : > { %p912_p5 = pnand %p911_p0, %p905_p8 }
  0xf2   : > { %v389_v5 = vpop.xlane.xlu0 %388 }
  0xf3   : > { %v394_v6 = vmul.f32 0.020833334, %v389_v5 }
  0xf5   : > { %v396_v7 = vsub.f32 %v734_v1, %v394_v6 }
  0xf6   : > { %v392_v8 = vpop.xlane.xlu0 %391 }
  0xf7   : > { %v395_v9 = vmul.f32 0.020833334, %v392_v8  ;;  %v398_v10 = vmul.f32 %v396_v7, %v396_v7 }
  0xf9   : > { %v397_v11 = vsub.f32 %v735_v2, %v395_v9  ;;  %v400_v12 = vsel %vm386_vm0, %v398_v10, 0.0  ;;  %v720_v2 = vld [vmem:[%s1306_s6] ss:$0 sm:$0xff] }
  0xfa   : > { %401 = vadd.xlane.f32.xlu1 %v400_v12 }
  0xfb   : > { %v399_v13 = vmul.f32 %v397_v11, %v397_v11 }
  0xfd   : > { %v403_v14 = vsel %vm386_vm0, %v399_v13, 0.0 }
  0xfe   : > { %404 = vadd.xlane.f32.xlu1 %v403_v14 }
 0x187   : > { %v402_v19 = vpop.xlane.xlu1 %401 }
 0x188   : > { %v406_v20 = vmul.f32 0.020833334, %v402_v19 }
 0x18a   : > { %v408_v21 = vadd.f32 1e-05, %v406_v20 }
 0x18b   : > { %v405_v22 = vpop.xlane.xlu1 %404 }
 0x18c   : > { %836 = vrsqrt.f32 %v408_v21  ;;  %v407_v23 = vmul.f32 0.020833334, %v405_v22 }
 0x18e   : > { %v409_v24 = vadd.f32 1e-05, %v407_v23 }
 0x190   : > { %838 = vrsqrt.f32 %v409_v24 }
 0x196   : > { %v837_v25 = vpop.eup %836 }
 0x197   : > { %v412_v26 = vmul.f32 %v837_v25, %v396_v7  ;;  %v739_v7 = vunpack.c.h.bf16 %v737_v63 }
 0x199   : > { %v421_v30 = vmul.f32 %v712_v27, %v412_v26 }
 0x19a   : > { %v839_v28 = vpop.eup %838 }
 0x19b   : > { %v413_v29 = vmul.f32 %v839_v28, %v397_v11  ;;  %v430_v33 = vadd.f32 %v713_v31, %v421_v30 }
 0x19d   : > { %v422_v32 = vmul.f32 %v712_v27, %v413_v29 }
 0x19f   : > { %v431_v34 = vadd.f32 %v713_v31, %v422_v32 }
 0x1a1   : > { %v432_v35 = vpack.c.bf16 %v431_v34, %v430_v33 }
 0x1a3   : > { %751 = vmatmul.mubr.msk.bf16.vlgmr.msra.gmra.mrb[0].mxu0 %vm386_vm0, %v432_v35 }
 0x276   : > { %v501_v37 = vpop.f32.mrb[0].mxu0 }
 0x277   : > { %v502_v38 = vadd.f32 %v714_v36, %v501_v37  ;;  %v752_v39 = vpop.f32.mrb[1].mxu0 }
 0x278   : > { %v504_v40 = vpop.f32.mrb[2].mxu0 }
 0x279   : > { %v505_v41 = vadd.f32 %v714_v36, %v504_v40  ;;  %v753_v42 = vpop.f32.mrb[3].mxu0  ;;  %v509_v43 = vsel %vm508_vm2, %v502_v38, 0.0 }
 0x27a   : > { %510 = vadd.xlane.f32.xlu0 %v509_v43 }
 0x27b   : > { %v512_v44 = vsel %vm508_vm2, %v505_v41, 0.0 }
 0x27c   : > { %513 = vadd.xlane.f32.xlu1 %v512_v44 }
 0x307   : > { %v511_v45 = vpop.xlane.xlu0 %510 }
 0x308   : > { %v516_v46 = vmul.f32 0.015625, %v511_v45 }
 0x309   : > { %v514_v47 = vpop.xlane.xlu1 %513 }
 0x30a   : > { %v518_v48 = vsub.f32 %v502_v38, %v516_v46  ;;  %v517_v49 = vmul.f32 0.015625, %v514_v47 }
 0x30c   : > { %v519_v50 = vsub.f32 %v505_v41, %v517_v49  ;;  %v520_v51 = vmul.f32 %v518_v48, %v518_v48 }
 0x30e   : > { %v522_v52 = vsel %vm508_vm2, %v520_v51, 0.0  ;;  %v521_v53 = vmul.f32 %v519_v50, %v519_v50 }
 0x30f   : > { %523 = vadd.xlane.f32.xlu0 %v522_v52 }
 0x310   : > { %v525_v54 = vsel %vm508_vm2, %v521_v53, 0.0 }
 0x311   : > { %526 = vadd.xlane.f32.xlu1 %v525_v54 }
 0x39c   : > { %v524_v55 = vpop.xlane.xlu0 %523 }
 0x39d   : > { %v528_v56 = vmul.f32 0.015625, %v524_v55 }
 0x39e   : > { %v527_v57 = vpop.xlane.xlu1 %526 }
 0x39f   : > { %v530_v58 = vadd.f32 1e-05, %v528_v56  ;;  %v529_v59 = vmul.f32 0.015625, %v527_v57 }
 0x3a1   : > { %840 = vrsqrt.f32 %v530_v58  ;;  %v531_v60 = vadd.f32 1e-05, %v529_v59 }
 0x3a3   : > { %842 = vrsqrt.f32 %v531_v60 }
 0x3ab   : > { %v841_v61 = vpop.eup %840 }
 0x3ac   : > { %v534_v0 = vmul.f32 %v841_v61, %v518_v48 }
 0x3ad   : > { %v843_v1 = vpop.eup %842 }
 0x3ae   : > { %v543_v4 = vmul.f32 %v719_v62, %v534_v0  ;;  %v535_v5 = vmul.f32 %v843_v1, %v519_v50 }
 0x3b0   : > { %v552_v6 = vadd.f32 %v720_v2, %v543_v4  ;;  %v544_v8 = vmul.f32 %v719_v62, %v535_v5 }
 0x3b2   : > { %v558_v9 = vadd.f32 %v738_v3, %v552_v6  ;;  %v553_v10 = vadd.f32 %v720_v2, %v544_v8 }
 0x3b4   : > { %v729_v11 = vpack.c.bf16 %v558_v9, %v558_v9  ;;  %v559_v12 = vadd.f32 %v739_v7, %v553_v10 }
 0x3b6   : > { %v730_v13 = vpack.c.bf16 %v559_v12, %v559_v12  ;;  %569 = vst.msk [vmem:[%s372_s13] sm:$0xf] %vm568_vm3, %v729_v11 }
 0x3b8   : > { %570 = vst.msk [vmem:[%s372_s13 + $0x4] sm:$0xf] %vm568_vm3, %v730_v13 }
 0x3b9   : > { %915 = shalt.err (!%p912_p5)
}
 0x3ba   : > { %s916_s11 = scalar_lea.hbm %s1249_s26, 128  ;;  %s920_s3 = scalar_lea.hbm %s1308_s8, 256 }
 0x3bb   : > { %p917_p9 = scmp.ne.s32.totalorder %s1249_s26, %s916_s11  ;;  %p921_p3 = scmp.lt.u32.totalorder %s1249_s26, %s1308_s8 }
 0x3bc   : > { %p922_p7 = scmp.lt.u32.totalorder %s920_s3, %s916_s11  ;;  %p924_p4 = scmp.lt.u32.totalorder %s916_s11, %s1249_s26 }
 0x3bd   : > { %p918_p1 = pnand %p917_p9, %p1143_p10 }
 0x3be   : > { %p923_p13 = por %p922_p7, %p921_p3 }
 0x3bf   : > { %p919_p2 = pneg %p918_p1 }
 0x3c0   : > { %p925_p6 = por %p924_p4, %p923_p13 }
 0x3c2   : > { %p926_p8 = pnand %p925_p6, %p919_p2 }
 0x3c4   : > { %929 = shalt.err (!%p926_p8)
}
 0x3c5   : > { %s997_s17 = smov 64   ;;  %s998_s18 = smov 4  }
 0x3c6   : > { %760 = dma.vmem_to_hbm [thread:$0]  (%p1143_p10), %s1251_s15, 128, %s1249_s26, %s572_s30, %s997_s17, %s997_s17, %s998_s18  }
 0x3c7 PF: > { %s1334_s19 = sld [smem:[#allocation11_spill]]  ;;  %s602_s25 = sand.u32 1, %s968_s27  }
 0x3c8   : > { %p1336_p11 = scmp.ge.s32.totalorder %s988_s10, 2  ;;  %s603_s22 = scalar_lea.sflag [#allocation4], %s602_s25 }
 0x3cd   : > { %p1335_p12 = scmp.ne.s32.totalorder %s1334_s19, 0 }
 0x3cf   : > { %p771_p0 = pnand %p1336_p11, %p1335_p12 }
 0x3d1   : > { %963 = dma.done.wait (!%p771_p0), %s603_s22, 128  }
 0x3d2   : > { %965 = vsyncadd (!%p771_p0), %s603_s22, 4294967168  ;;  %s25_s10 = sadd.s32 1, %s988_s10   ;;  %s1337_s27 = smov %s972_s28 }
 0x3d3   : > { %p22_p5 = scmp.ge.s32.totalorder %s25_s10, 4   ;;  %s1338_s28 = smov %s976_s29 }
 0x3d4   : > { %s1339_s29 = smov %s1152_s24  ;;  %s1340_s30 = smov %s984_s9 }
 0x3d5   : > { %s1341_s9 = smov %s1343_s21  ;;  %24 = sbr.rel (!%p22_p5) target bundleno = 9 (0x9), region = 104 }
 0x3dc   :  { %608 = vsyncpa [#allocation3], 1 }
 0x3dd   :  { %610 = vsyncpa [#allocation3 + $0x1], 1 }
 0x3de   :  { %611 = vsyncpa [#allocation6], 1 }
 0x3df   :  { %612 = vsyncpa [#allocation4], 1 }
 0x3e0   :  { %614 = vsyncpa [#allocation4 + $0x1], 1 }

</bundles_post_ra>
